<compile_context>
chip_gen: v5e
topology: v5e:2x2
jax: 0.10.0
libtpu: 0.0.40
codegen_flags: <defaults>
</compile_context>

<pallas_src>
import functools

import jax
import jax.numpy as jnp
from jax.experimental import pallas as pl
from jax.experimental.pallas import tpu as pltpu


def skipgram_kernel(idx_ref, emb_hbm, w_ref, b_ref, out_ref, x_ref, sem, *,
                    compute_dtype):
    # idx_ref : (N_pad,) int32, SMEM (scalar prefetch)
    # emb_hbm : (V, E) embedding table, left in HBM (memory_space=ANY)
    # w_ref   : (tv, E) weight tile (torch Linear layout, no transpose)
    # b_ref   : (1, tv) bias tile
    # out_ref : (tb, tv) logits tile
    # x_ref   : (tb, E) VMEM scratch holding the gathered embedding rows
    # sem     : DMA semaphore for the row gather
    i = pl.program_id(0)            # batch tile index
    tb = x_ref.shape[0]

    # Gather the tb embedding rows for this batch tile once (first vocab tile)
    # and reuse them for every vocab tile j: row-by-row async DMA from HBM,
    # driven by the SMEM-resident token ids.
    @pl.when(pl.program_id(1) == 0)
    def _gather():
        @pl.loop(0, tb)
        def _start(r):
            tok = idx_ref[i * tb + r]
            pltpu.make_async_copy(emb_hbm.at[pl.ds(tok, 1), :],
                                  x_ref.at[pl.ds(r, 1), :],
                                  sem).start()

        @pl.loop(0, tb)
        def _wait(r):
            # All row copies have identical size, so waiting tb times on an
            # identically-shaped descriptor drains the semaphore exactly.
            pltpu.make_async_copy(emb_hbm.at[pl.ds(0, 1), :],
                                  x_ref.at[pl.ds(0, 1), :],
                                  sem).wait()

    # Projection: (tb, E) . (tv, E)^T -> (tb, tv); contract the E axes directly
    # against the torch-layout weight tile (transposed-RHS matmul on the MXU).
    x = x_ref[...].astype(compute_dtype)
    logits = jax.lax.dot_general(
        x, w_ref[...],
        dimension_numbers=(((1,), (1,)), ((), ())),
        preferred_element_type=jnp.float32)
    out_ref[...] = logits + b_ref[...]


def skipgram_forward(indices, embedding, weight, bias, *, tb=128, tv=256,
                     compute_dtype=jnp.float32):
    """Pallas SkipGram forward.

    indices: int array (any shape); embedding: (V, E); weight: (V, E);
    bias: (V,).  Returns float32 logits of shape indices.shape + (V,).
    tb: batch-tile rows (128; use 256 on v6e/v7x).  tv: vocab-tile columns
    (multiple of 128).  compute_dtype=bfloat16 enables the bf16 MXU path.
    """
    V, E = embedding.shape
    assert weight.shape == (V, E) and bias.shape == (V,)
    orig_shape = indices.shape

    # Flatten ids, clamp to valid rows (keeps the HBM row DMA in bounds) and
    # pad the batch to a tile multiple; padded rows are sliced off afterwards.
    # TODO(synk): PyTorch nn.Embedding raises on out-of-range ids; here they
    # are clamped instead (no in-kernel error reporting).
    flat = jnp.clip(indices.reshape(-1).astype(jnp.int32), 0, V - 1)
    n = flat.shape[0]
    flat = jnp.pad(flat, (0, (-n) % tb))
    nb = flat.shape[0] // tb

    # Pad the vocab axis of the projection to a tile multiple (zero rows/bias
    # are sliced off the output).  Stage the weight in the compute dtype
    # (bf16 halves its HBM/VMEM traffic; accumulation stays f32).
    v_pad = (-V) % tv
    w = weight.astype(compute_dtype)
    b = bias.astype(jnp.float32)
    if v_pad:
        w = jnp.pad(w, ((0, v_pad), (0, 0)))
        b = jnp.pad(b, (0, v_pad))
    Vp = V + v_pad
    nv = Vp // tv
    b2d = b.reshape(1, Vp)

    out = pl.pallas_call(
        functools.partial(skipgram_kernel, compute_dtype=compute_dtype),
        out_shape=jax.ShapeDtypeStruct((nb * tb, Vp), jnp.float32),
        grid_spec=pltpu.PrefetchScalarGridSpec(
            num_scalar_prefetch=1,                 # token ids -> SMEM
            grid=(nb, nv),
            in_specs=[
                pl.BlockSpec(memory_space=pl.ANY),                  # emb in HBM
                pl.BlockSpec((tv, E), lambda i, j, idx: (j, 0)),    # weight tile
                pl.BlockSpec((1, tv), lambda i, j, idx: (0, j)),    # bias tile
            ],
            out_specs=pl.BlockSpec((tb, tv), lambda i, j, idx: (i, j)),
            scratch_shapes=[
                pltpu.VMEM((tb, E), embedding.dtype),   # gathered embedding rows
                pltpu.SemaphoreType.DMA(()),            # gather DMA semaphore
            ],
        ),
        compiler_params=pltpu.CompilerParams(
            dimension_semantics=("parallel", "arbitrary"),
            vmem_limit_bytes=32 * 1024 * 1024,
        ),
    )(flat, embedding, w, b2d)

    return out[:n, :V].reshape(orig_shape + (V,))


if __name__ == "__main__":
    # Small but tile-exercising shapes: 2 batch tiles x 2 vocab tiles.
    V, E = 512, 256          # vocab size / embedding size
    B, S = 4, 64             # batch of index sequences -> 256 tokens

    key = jax.random.PRNGKey(0)
    k_emb, k_w, k_b, k_idx = jax.random.split(key, 4)

    # PyTorch-default-style init: Embedding ~ N(0,1); Linear ~ U(+-1/sqrt(E)).
    embedding = jax.random.normal(k_emb, (V, E), dtype=jnp.float32)
    bound = 1.0 / (E ** 0.5)
    weight = jax.random.uniform(k_w, (V, E), minval=-bound, maxval=bound,
                                dtype=jnp.float32)
    bias = jax.random.uniform(k_b, (V,), minval=-bound, maxval=bound,
                              dtype=jnp.float32)
    indices = jax.random.randint(k_idx, (B, S), 0, V, dtype=jnp.int32)

    # Plain-JAX reference (PyTorch semantics).
    ref = jnp.take(embedding, indices, axis=0) @ weight.T + bias

    # f32 path: tight parity with the reference.
    logits = jax.block_until_ready(
        skipgram_forward(indices, embedding, weight, bias))
    assert logits.shape == (B, S, V)
    assert jnp.allclose(logits, ref, atol=1e-3, rtol=1e-3)

    # bf16 MXU path (recommended on v5e/v6e): f32 accumulation, looser tol.
    logits_bf16 = jax.block_until_ready(
        skipgram_forward(indices, embedding, weight, bias,
                         compute_dtype=jnp.bfloat16))
    assert logits_bf16.shape == (B, S, V)
    assert jnp.allclose(logits_bf16, ref, atol=5e-2, rtol=5e-2)

    print("KERNEL_OK")
</pallas_src>

<mosaic_0001>
module attributes {stable_mosaic.version = 11 : i64} {
  func.func @skipgram_kernel(%arg0: i32, %arg1: i32, %arg2: memref<256xi32, #tpu.memory_space<smem>>, %arg3: memref<512x256xf32, #tpu.memory_space<any>>, %arg4: memref<256x256xf32, #tpu.memory_space<vmem>>, %arg5: memref<1x256xf32, #tpu.memory_space<vmem>>, %arg6: memref<128x256xf32, #tpu.memory_space<vmem>>, %arg7: memref<128x256xf32, #tpu.memory_space<vmem>>, %arg8: memref<!tpu.dma_semaphore, #tpu.memory_space<semaphore_mem>>) attributes {dimension_semantics = [#tpu.dimension_semantics<parallel>, #tpu.dimension_semantics<arbitrary>], iteration_bounds = array<i64: 2, 2>, scalar_prefetch = 1 : i64, scratch_operands = 2 : i64, tpu.core_type = #tpu.core_type<tc>, window_params = [{}, {transform_indices = @transform_1, window_bounds = array<i64: 256, 256>}, {transform_indices = @transform_2, window_bounds = array<i64: 1, 256>}, {transform_indices = @transform_3, window_bounds = array<i64: 128, 256>}]} {
    %c0_i32 = arith.constant 0 : i32
    %0 = arith.cmpi eq, %arg1, %c0_i32 : i32
    %1 = arith.extui %0 : i1 to i32
    %c0_i32_0 = arith.constant 0 : i32
    %2 = arith.cmpi ne, %1, %c0_i32_0 : i32
    scf.if %2 {
      %c0_i32_8 = arith.constant 0 : i32
      %c128_i32 = arith.constant 128 : i32
      %10 = arith.addi %c0_i32_8, %c128_i32 : i32
      %c1_i32 = arith.constant 1 : i32
      scf.for %arg9 = %c0_i32_8 to %10 step %c1_i32  : i32 {
        %c1_i32_13 = arith.constant 1 : i32
        %12 = arith.muli %arg9, %c1_i32_13 : i32
        %c0_i32_14 = arith.constant 0 : i32
        %13 = arith.addi %c0_i32_14, %12 : i32
        %c128_i32_15 = arith.constant 128 : i32
        %14 = arith.muli %arg0, %c128_i32_15 : i32
        %15 = arith.addi %14, %13 : i32
        %16 = arith.index_cast %15 : i32 to index
        %17 = memref.load %arg2[%16] : memref<256xi32, #tpu.memory_space<smem>>
        %c0_i32_16 = arith.constant 0 : i32
        %18 = tpu.memref_slice %arg3[%17, %c0_i32_16] : memref<512x256xf32, #tpu.memory_space<any>> -> memref<1x256xf32, #tpu.memory_space<any>>
        %c0_i32_17 = arith.constant 0 : i32
        %19 = tpu.memref_slice %arg7[%13, %c0_i32_17] : memref<128x256xf32, #tpu.memory_space<vmem>> -> memref<1x256xf32, #tpu.memory_space<vmem>>
        tpu.enqueue_dma source(%18 : memref<1x256xf32, #tpu.memory_space<any>>) target(%19 : memref<1x256xf32, #tpu.memory_space<vmem>>) target_semaphore(%arg8 : memref<!tpu.dma_semaphore, #tpu.memory_space<semaphore_mem>>)
      }
      %c128_i32_9 = arith.constant 128 : i32
      %c0_i32_10 = arith.constant 0 : i32
      %c128_i32_11 = arith.constant 128 : i32
      %11 = arith.addi %c0_i32_10, %c128_i32_11 : i32
      %c1_i32_12 = arith.constant 1 : i32
      scf.for %arg9 = %c0_i32_10 to %11 step %c1_i32_12  : i32 {
        %c0_i32_13 = arith.constant 0 : i32
        %c0_i32_14 = arith.constant 0 : i32
        %12 = tpu.memref_slice %arg3[%c0_i32_13, %c0_i32_14] : memref<512x256xf32, #tpu.memory_space<any>> -> memref<1x256xf32, #tpu.memory_space<any>>
        %c0_i32_15 = arith.constant 0 : i32
        %c0_i32_16 = arith.constant 0 : i32
        %13 = tpu.memref_slice %arg7[%c0_i32_15, %c0_i32_16] : memref<128x256xf32, #tpu.memory_space<vmem>> -> memref<1x256xf32, #tpu.memory_space<vmem>>
        tpu.wait_dma2 semaphore(%arg8 : memref<!tpu.dma_semaphore, #tpu.memory_space<semaphore_mem>>) src(%12 : memref<1x256xf32, #tpu.memory_space<any>>) dst(%13 : memref<1x256xf32, #tpu.memory_space<vmem>>)
      }
    } else {
    }
    %c0 = arith.constant 0 : index
    %c0_1 = arith.constant 0 : index
    %3 = vector.load %arg7[%c0, %c0_1] : memref<128x256xf32, #tpu.memory_space<vmem>>, vector<128x256xf32>
    %c0_2 = arith.constant 0 : index
    %c0_3 = arith.constant 0 : index
    %4 = vector.load %arg4[%c0_2, %c0_3] : memref<256x256xf32, #tpu.memory_space<vmem>>, vector<256x256xf32>
    %cst = arith.constant dense<0.000000e+00> : vector<128x256xf32>
    %5 = tpu.matmul %3, %4, %cst {dimension_numbers = #tpu.dot_dimension_numbers<[1], [1], [0], [0], [0, 0, 1, 0], [], []>} : vector<128x256xf32>, vector<256x256xf32>, vector<128x256xf32> -> vector<128x256xf32>
    %c0_4 = arith.constant 0 : index
    %c0_5 = arith.constant 0 : index
    %6 = vector.load %arg5[%c0_4, %c0_5] : memref<1x256xf32, #tpu.memory_space<vmem>>, vector<1x256xf32>
    %7 = vector.broadcast %6 : vector<1x256xf32> to vector<128x256xf32>
    %8 = arith.addf %5, %7 : vector<128x256xf32>
    %c0_6 = arith.constant 0 : index
    %c0_7 = arith.constant 0 : index
    %9 = vector.load %arg6[%c0_6, %c0_7] : memref<128x256xf32, #tpu.memory_space<vmem>>, vector<128x256xf32>
    tpu.vector_store %arg6[%c0_6, %c0_7], %8 {strides = array<i32>} : memref<128x256xf32, #tpu.memory_space<vmem>>, vector<128x256xf32>,
    return
  }
  func.func @transform_1(%arg0: i32, %arg1: i32, %arg2: memref<256xi32, #tpu.memory_space<smem>>) -> (i32, i32) {
    %c0_i32 = arith.constant 0 : i32
    %c0_i32_0 = arith.constant 0 : i32
    return %arg1, %c0_i32 : i32, i32
  }
  func.func @transform_2(%arg0: i32, %arg1: i32, %arg2: memref<256xi32, #tpu.memory_space<smem>>) -> (i32, i32) {
    %c0_i32 = arith.constant 0 : i32
    %c0_i32_0 = arith.constant 0 : i32
    return %c0_i32, %arg1 : i32, i32
  }
  func.func @transform_3(%arg0: i32, %arg1: i32, %arg2: memref<256xi32, #tpu.memory_space<smem>>) -> (i32, i32) {
    %c0_i32 = arith.constant 0 : i32
    return %arg0, %arg1 : i32, i32
  }
}

</mosaic_0001>

<bundles_post_ra>
// kernel: tpu_custom_call.1
= control target key start
LH: loop header
LB: loop body
LE: loop exit
PB: predicated region body
PF: predicated region fallthrough
CT: control target
= control target key end

     0   :  { %s1221_s18 = smov [#allocation5]   ;;  %s1616_s0 = inlined_call_operand.hbm [shape: s32[256], index: 0, kind: input, shape index: {}]   ;;  %s1617_s1 = inlined_call_operand.hbm [shape: f32[512,256], index: 1, kind: input, shape index: {}]   ;;  %s1618_s2 = inlined_call_operand.hbm [shape: f32[512,256], index: 2, kind: input, shape index: {}]   ;;  %s1619_s3 = inlined_call_operand.hbm [shape: f32[1,512], index: 3, kind: input, shape index: {}]   ;;  %s1620_s4 = inlined_call_operand.hbm [shape: f32[256,512], index: 4, kind: output, shape index: {}]  }
   0x1   :  { %1628 = sst [smem:[#allocation26_spill]] %s1618_s2  ;;  %s10_s17 = sshll.u32 %s1616_s0, 4  ;;  %s11_s17 = int_to_ptr.hbm [resolvable:$true] %s10_s17 }
   0x2   :  { %1629 = sst [smem:[#allocation27_spill]] %s1619_s3 }
   0x3   :  { %13 = dma.hbm_to_smem %s11_s17, 32, %s1221_s18, [#allocation4] }
   0x4   :  { %1153 = dma.done.wait [#allocation4], 32 }
   0x5   :  { %1154 = vsyncadd [#allocation4], 4294967264 }
   0x6   :  { %16 = sfence }
   0x7   :  { %17 = vsyncpa [#allocation7], 0 }
   0x8   :  { %19 = vsyncpa [#allocation7 + $0x1], 0 }
   0x9   :  { %20 = vsyncpa [#allocation10], 0 }
   0xa   :  { %22 = vsyncpa [#allocation10 + $0x1], 0 }
   0xb   :  { %23 = vsyncpa [#allocation8], 0 }
   0xc   :  { %25 = vsyncpa [#allocation8 + $0x1], 0  ;;  %s1258_s19 = smov 0   ;;  %s1260_s20 = smov 0  }
   0xd   :  { %s1262_s21 = smov 0   ;;  %s1264_s22 = smov 0  }
   0xe   :  { %s1266_s0 = smov 0   ;;  %s1268_s23 = smov 0  }
   0xf   :  { %s1270_s24 = smov 0   ;;  %s1272_s25 = smov 0  }
  0x10   :  { %s1274_s26 = smov 0   ;;  %s1276_s27 = smov 0  }
  0x11   :  { %s1278_s28 = smov 0  }
  0x12 LB: > { %1630 = sst [smem:[#allocation18_spill]] %s1187_s0  ;;  %s817_s29 = sadd.s32 4294967295, %s1211_s28   ;;  %s1211_s28 = sphi %s1278_s28, %s31_s28   ;;  %s1207_s27 = sphi %s1276_s27, %s1653_s27   ;;  %s1203_s26 = sphi %s1274_s26, %s1652_s26   ;;  %s1199_s25 = sphi %s1272_s25, %s1651_s25   ;;  %s1195_s24 = sphi %s1270_s24, %s1650_s24   ;;  %s1191_s23 = sphi %s1268_s23, %s1649_s23   ;;  %s1187_s0 = sphi %s1266_s0, %s1648_s0   ;;  %s1183_s22 = sphi %s1264_s22, %s1647_s22   ;;  %s1179_s21 = sphi %s1262_s21, %s1656_s21   ;;  %s1175_s20 = sphi %s1260_s20, %s1655_s20   ;;  %s1171_s19 = sphi %s1258_s19, %s1654_s19  }
  0x13   : > { %1631 = sst [smem:[#allocation19_spill]] %s1191_s23  ;;  %s818_s30 = sadd.s32 4294967294, %s1211_s28  }
  0x14   : > { %1632 = sst [smem:[#allocation20_spill]] %s1203_s26  ;;  %s40_s5 = sadd.s32 1, %s1203_s26 }
  0x15   : > { %1633 = sst [smem:[#allocation21_spill]] %s1207_s27  ;;  %s43_s6 = sadd.s32 1, %s1207_s27 }
  0x16   : > { %p41_p0 = scmp.ge.s32.totalorder %s40_s5, 2  ;;  %s50_s7 = sadd.s32 1, %s1191_s23 }
  0x17   : > { %p57_p1 = scmp.ne.s32.totalorder %s1191_s23, %s1187_s0  ;;  %p58_p2 = scmp.eq.s32.totalorder %s1211_s28, 0 }
  0x18   : > { %s1658_s5 = smov (%p41_p0, %s40_s5), 0  ;;  %s1660_s6 = smov (!%p41_p0, %s43_s6), %s1207_s27 }
  0x19   : > { %1634 = sst [smem:[#allocation22_spill]] %s1658_s5  ;;  %s47_s8 = ssub.s32 %s1203_s26, %s1658_s5 }
  0x1a   : > { %p1324_p3 = por %p58_p2, %p57_p1  ;;  %p45_p4 = scmp.ge.s32.totalorder %s1660_s6, 2 }
  0x1b   : > { %p48_p5 = scmp.eq.s32.totalorder %s47_s8, 0  ;;  %p63_p6 = scmp.ne.s32.totalorder %s1187_s0, %s1183_s22 }
  0x1c   : > { %p64_p7 = scmp.eq.s32.totalorder %s817_s29, 0  ;;  %s1662_s6 = smov (%p45_p4, %s1660_s6), 0 }
  0x1d   : > { %1636 = sst [smem:[#allocation23_spill]] %s1662_s6  ;;  %s99_s12 = ssub.s32 %s1207_s27, %s1662_s6 }
  0x1e   : > { %s1332_s10 = scalar_select %p48_p5, %s1191_s23, %s50_s7  }
  0x1f   : > { %p1334_p8 = por %p64_p7, %p63_p6  ;;  %s101_s13 = sor.u32 %s99_s12, %s47_s8 }
  0x20   : > { %1637 = sst [smem:[#allocation24_spill]] %s1332_s10  ;;  %s104_s14 = sadd.s32 1, %s1179_s21 }
  0x21   : > { %p102_p9 = scmp.eq.s32.totalorder %s101_s13, 0  ;;  %p114_p10 = scmp.ne.s32.totalorder %s1179_s21, %s1175_s20 }
  0x22   : > { %p115_p11 = scmp.eq.s32.totalorder %s817_s29, 3  ;;  %p120_p12 = scmp.ne.s32.totalorder %s1175_s20, %s1171_s19 }
  0x23   : > { %s1346_s15 = scalar_select %p102_p9, %s1179_s21, %s104_s14  }
  0x24   : > { %p1348_p13 = por %p115_p11, %p114_p10  ;;  %p121_p0 = scmp.eq.s32.totalorder %s818_s30, 3 }
  0x25   : > { %1639 = sst [smem:[#allocation25_spill]] %s1346_s15  ;;  %p863_p1 = scmp.lt.s32.totalorder %s1211_s28, 4 }
  0x26   : > { %p1353_p2 = por %p121_p0, %p120_p12  ;;  %s141_s18 = sand.u32 1, %s1191_s23  }
  0x27   : > { %s821_s22 = sshll.u32 %s141_s18, 9  ;;  %s844_s29 = sshll.u32 %s1203_s26, 9 }
  0x28   : > { %s1642_s2 = sld [smem:[#allocation26_spill]]  ;;  %s145_s13 = scalar_lea.vmem [#allocation6], %s821_s22 }
  0x29   : > { %s154_s14 = sshll.u32 %s145_s13, 4  ;;  %p1364_p4 = pnand %p863_p1, %p1324_p3  ;;  %s155_s14 = int_to_ptr.vmem [resolvable:$true] %s154_s14 }
  0x2a   : > { %p827_p5 = scmp.ge.s32.totalorder %s1211_s28, 1  ;;  %s142_s5 = scalar_lea.sflag [#allocation7], %s141_s18 }
  0x2b   : > { %s1222_s27 = smov 256   ;;  %s1223_s10 = smov 16  }
  0x2c   : > { %p181_p6 = scmp.lt.s32.totalorder %s1211_s28, 5  ;;  %s826_s22 = sshll.u32 %s1203_s26, 1 }
  0x2d   : > { %s1644_s3 = sld [smem:[#allocation27_spill]]  ;;  %s165_s23 = scalar_lea.sflag [#allocation10], %s141_s18 }
  0x2e   : > { %s151_s12 = scalar_lea.hbm %s1642_s2, %s844_s29  ;;  %s825_s29 = sshll.u32 %s141_s18, 1 }
  0x2f   : > { %s152_s6 = sshll.u32 %s151_s12, 4  ;;  %p182_p7 = pnand %p827_p5, %p181_p6  ;;  %s153_s6 = int_to_ptr.hbm [resolvable:$true] %s152_s6 }
  0x30   : > { %855 = dma.hbm_to_vmem [thread:$0]  (!%p1364_p4), %s153_s6, 8192, %s155_s14, %s142_s5, %s1222_s27, %s1222_s27, %s1223_s10  }
  0x31   : > { %s168_s12 = scalar_lea.vmem [#allocation9], %s825_s29  ;;  %185 = sbr.rel (%p182_p7) target bundleno = 442 (0x1ba), region = 28 }
  0x32   : > { %s176_s13 = sshll.u32 %s168_s12, 4  ;;  %s187_s27 = sand.u32 (!%p182_p7), 1, %s1187_s0   ;;  %s177_s13 = int_to_ptr.vmem [resolvable:$true] %s176_s13 }
  0x33   : > { %s172_s9 = scalar_lea.hbm %s1644_s3, %s826_s22  ;;  %s828_s5 = sshll.u32 (!%p182_p7), %s187_s27, 9 }
  0x34   : > { %s174_s2 = sshll.u32 %s172_s9, 4  ;;  %s188_s6 = scalar_lea.sflag (!%p182_p7), [#allocation7], %s187_s27  ;;  %s175_s2 = int_to_ptr.hbm [resolvable:$true] %s174_s2 }
  0x35   : > { %858 = dma.hbm_to_vmem [thread:$0]  (!%p1364_p4), %s175_s2, 32, %s177_s13, %s165_s23  }
  0x36   : > { %s1379_s10 = scalar_lea.vmem [#allocation6], %s828_s5 }
  0x37   : > { %1156 = dma.done.wait (%p1334_p8), %s188_s6, 8192  }
  0x38   : > { %1158 = vsyncadd (%p1334_p8), %s188_s6, 4294959104  ;;  %s829_s14 = sshll.u32 %s187_s27, 1  ;;  %s198_s29 = scalar_lea.sflag [#allocation10], %s187_s27 }
  0x39   : > { %s1385_s22 = scalar_lea.vmem [#allocation9], %s829_s14 }
  0x3a   : > { %1160 = dma.done.wait (%p1334_p8), %s198_s29, 32  }
  0x3b   : > { %1162 = vsyncadd (%p1334_p8), %s198_s29, 4294967264  ;;  %s1625_s2 = sand.u32 1, %s1175_s20   ;;  %p831_p3 = scmp.ne.s32.totalorder %s1195_s24, 0 }
  0x3c   : > { %s830_s23 = sshll.u32 %s1625_s2, 8  ;;  %s1397_s30 = smov (!%p831_p3), 0  }
  0x3d   : > { %s1394_s18 = scalar_lea.vmem [#allocation11], %s830_s23  ;;  %235 = sbr.rel (%p831_p3) target bundleno = 117 (0x75), region = 40 }
  0x42 LB: >> { %s832_s11 = sshll.u32 %s1199_s25, 7  ;;  %s250_s8 = sshrl.u32 %s1215_s30, 3  ;;  %s1215_s30 = sphi %s1397_s30, %s241_s30  }
  0x43   : >> { %s243_s7 = sadd.s32 %s1215_s30, %s832_s11  ;;  %s251_s12 = sand.u32 7, %s1215_s30  }
  0x44   : >> { %s244_s9 = sld [smem:[#allocation5 + %s243_s7]]  ;;  %s834_s13 = sshll.u32 %s250_s8, 4 }
  0x45   : >> { %s253_s27 = sadd.s32 %s834_s13, %s251_s12  ;;  %s1053_s13 = scalar_lea.hbm %s1617_s1, 1024 }
  0x46   : >> { %s254_s5 = scalar_lea.vmem [#allocation2], %s253_s27 }
  0x47   : >> { %s1406_s6 = sshll.u32 %s254_s5, 4  ;;  %s258_s6 = int_to_ptr.vmem [resolvable:$true] %s1406_s6 }
  0x4a   : >> { %s245_s14 = sshrl.u32 %s244_s9, 3  ;;  %s246_s29 = sand.u32 7, %s244_s9  }
  0x4b   : >> { %s833_s23 = sshll.u32 %s245_s14, 4 }
  0x4c   : >> { %s248_s2 = sadd.s32 %s833_s23, %s246_s29 }
  0x4d   : >> { %s249_s0 = scalar_lea.hbm %s1617_s1, %s248_s2 }
  0x4e   : >> { %s1412_s15 = sshll.u32 %s249_s0, 4  ;;  %s256_s15 = int_to_ptr.hbm [resolvable:$true] %s1412_s15 }
  0x4f   : >> { %s1049_s11 = sshra.s32 %s256_s15, 4  ;;  %s1050_s11 = int_to_ptr.hbm [resolvable:$true] %s1049_s11 }
  0x50   : >> { %s1051_s7 = scalar_lea.hbm %s1050_s11, 2  ;;  %p1054_p9 = scmp.lt.s32.totalorder %s1050_s11, %s1617_s1 }
  0x51   : >> { %p1052_p8 = scmp.ne.s32.totalorder %s1050_s11, %s1051_s7  ;;  %p1055_p10 = scmp.lt.s32.totalorder %s1053_s13, %s1051_s7 }
  0x53   : >> { %p1056_p11 = por %p1055_p10, %p1054_p9 }
  0x55   : >> { %p1057_p12 = pnand %p1056_p11, %p1052_p8 }
  0x57   : >> { %1060 = shalt.err (!%p1057_p12)  }
  0x58   : >> { %s1061_s3 = sshra.s32 %s258_s6, 4  ;;  %s1224_s26 = smov [#allocation2]   ;;  %s1062_s3 = int_to_ptr.vmem [resolvable:$true] %s1061_s3 }
  0x59   : >> { %s1063_s0 = scalar_lea.vmem %s1062_s3, 2  ;;  %s1065_s2 = scalar_lea.vmem %s1224_s26, 256 }
  0x5a   : >> { %p1064_p0 = scmp.ne.s32.totalorder %s1062_s3, %s1063_s0  ;;  %p1066_p1 = scmp.lt.s32.totalorder %s1062_s3, [#allocation2] }
  0x5b   : >> { %p1067_p4 = scmp.lt.s32.totalorder %s1065_s2, %s1063_s0 }
  0x5d   : >> { %p1068_p5 = por %p1067_p4, %p1066_p1 }
  0x5f   : >> { %p1069_p6 = pnand %p1068_p5, %p1064_p0 }
  0x61   : >> { %1072 = shalt.err (!%p1069_p6)  }
  0x62   : >> { %s1225_s5 = smov 128   ;;  %s1226_s14 = smov 1  }
  0x63   : >> { %262 = dma.hbm_to_vmem [thread:$0]  %s256_s15, 32, %s258_s6, [#allocation3], %s1225_s5, %s1225_s5, %s1226_s14 }
  0x64   : >> { %s241_s30 = sadd.s32 1, %s1215_s30  }
  0x65   : >> { %p238_p7 = scmp.ge.s32.totalorder %s241_s30, 128  }
  0x66   : > { %s1217_s29 = smov (%p238_p7), 0  }
  0x67   : > { %240 = sbr.rel (!%p238_p7) target bundleno = 66 (0x42), region = 106 }
  0x6c LB: >> { %1163 = dma.done.wait [#allocation3], 32  ;;  %s1219_s29 = sphi %s1217_s29, %s268_s29  }
  0x6d   : >> { %1164 = vsyncadd [#allocation3], 4294967264  ;;  %s268_s29 = sadd.s32 1, %s1219_s29  }
  0x6e   : >> { %p265_p3 = scmp.ge.s32.totalorder %s268_s29, 128  }
  0x70   : > { %267 = sbr.rel (!%p265_p3) target bundleno = 108 (0x6c), region = 117 }
  0x75 PF: > { %v366_v0 = vld [vmem:[%s1379_s10 + $0x1f0] sm:$0xff]  ;;  %v367_v1 = vld [vmem:[%s1379_s10 + $0x1f8] sm:$0xff]  ;;  %v364_v4 = vld [vmem:[%s1379_s10 + $0x1e0] sm:$0xff]  ;;  %s837_s15 = sshll.u32 %s1195_s24, 1  ;;  %s682_s23 = sshll.u32 %s1394_s18, 4  ;;  %s683_s23 = int_to_ptr.vmem [resolvable:$true] %s682_s23 }
  0x76   : > { %504 = vmatpush.xpose.msra.mxu2 %v366_v0  ;;  %569 = vmatpush.xpose.msra.mxu3 %v367_v1  ;;  %v334_v2 = vld [vmem:[%s1379_s10 + $0xf0] sm:$0xff]  ;;  %v335_v3 = vld [vmem:[%s1379_s10 + $0xf8] sm:$0xff]  ;;  %v365_v5 = vld [vmem:[%s1379_s10 + $0x1e8] sm:$0xff]  ;;  %s1645_s7 = sand.u32 1, %s1175_s20   ;;  %s1093_s3 = scalar_lea.hbm %s1620_s4, 1024 }
  0x77   : > { %374 = vmatpush.xpose.msra.mxu0 %v334_v2  ;;  %439 = vmatpush.xpose.msra.mxu1 %v335_v3  ;;  %v332_v6 = vld [vmem:[%s1379_s10 + $0xe0] sm:$0xff]  ;;  %v333_v7 = vld [vmem:[%s1379_s10 + $0xe8] sm:$0xff]  ;;  %v362_v8 = vld [vmem:[%s1379_s10 + $0x1d0] sm:$0xff]  ;;  %s667_s8 = scalar_lea.sflag [#allocation8], %s1645_s7 }
  0x78   : > { %v363_v9 = vld [vmem:[%s1379_s10 + $0x1d8] sm:$0xff]  ;;  %v330_v10 = vld [vmem:[%s1379_s10 + $0xd0] sm:$0xff]  ;;  %v360_v12 = vld [vmem:[%s1379_s10 + $0x1c0] sm:$0xff] }
  0x79   : > { %v331_v11 = vld [vmem:[%s1379_s10 + $0xd8] sm:$0xff]  ;;  %v361_v13 = vld [vmem:[%s1379_s10 + $0x1c8] sm:$0xff]  ;;  %v328_v14 = vld [vmem:[%s1379_s10 + $0xc0] sm:$0xff] }
  0x7a   : > { %505 = vmatpush.xpose.msra.mxu2 %v364_v4  ;;  %570 = vmatpush.xpose.msra.mxu3 %v365_v5  ;;  %v329_v15 = vld [vmem:[%s1379_s10 + $0xc8] sm:$0xff]  ;;  %v358_v16 = vld [vmem:[%s1379_s10 + $0x1b0] sm:$0xff]  ;;  %v359_v17 = vld [vmem:[%s1379_s10 + $0x1b8] sm:$0xff] }
  0x7b   : > { %375 = vmatpush.xpose.msra.mxu0 %v332_v6  ;;  %440 = vmatpush.xpose.msra.mxu1 %v333_v7  ;;  %v326_v18 = vld [vmem:[%s1379_s10 + $0xb0] sm:$0xff]  ;;  %v327_v19 = vld [vmem:[%s1379_s10 + $0xb8] sm:$0xff]  ;;  %v356_v20 = vld [vmem:[%s1379_s10 + $0x1a0] sm:$0xff] }
  0x7c   : > { %v357_v21 = vld [vmem:[%s1379_s10 + $0x1a8] sm:$0xff]  ;;  %v324_v22 = vld [vmem:[%s1379_s10 + $0xa0] sm:$0xff]  ;;  %v354_v24 = vld [vmem:[%s1379_s10 + $0x190] sm:$0xff] }
  0x7d   : > { %v325_v23 = vld [vmem:[%s1379_s10 + $0xa8] sm:$0xff]  ;;  %v355_v25 = vld [vmem:[%s1379_s10 + $0x198] sm:$0xff]  ;;  %v322_v26 = vld [vmem:[%s1379_s10 + $0x90] sm:$0xff] }
  0x7e   : > { %506 = vmatpush.xpose.msra.mxu2 %v362_v8  ;;  %571 = vmatpush.xpose.msra.mxu3 %v363_v9  ;;  %v323_v27 = vld [vmem:[%s1379_s10 + $0x98] sm:$0xff]  ;;  %v352_v28 = vld [vmem:[%s1379_s10 + $0x180] sm:$0xff]  ;;  %v353_v29 = vld [vmem:[%s1379_s10 + $0x188] sm:$0xff] }
  0x7f   : > { %376 = vmatpush.xpose.msra.mxu0 %v330_v10  ;;  %441 = vmatpush.xpose.msra.mxu1 %v331_v11  ;;  %v320_v30 = vld [vmem:[%s1379_s10 + $0x80] sm:$0xff]  ;;  %v321_v31 = vld [vmem:[%s1379_s10 + $0x88] sm:$0xff]  ;;  %v350_v32 = vld [vmem:[%s1379_s10 + $0x170] sm:$0xff] }
  0x80   : > { %v351_v33 = vld [vmem:[%s1379_s10 + $0x178] sm:$0xff]  ;;  %v318_v34 = vld [vmem:[%s1379_s10 + $0x70] sm:$0xff]  ;;  %v348_v36 = vld [vmem:[%s1379_s10 + $0x160] sm:$0xff] }
  0x81   : > { %v319_v35 = vld [vmem:[%s1379_s10 + $0x78] sm:$0xff]  ;;  %v349_v37 = vld [vmem:[%s1379_s10 + $0x168] sm:$0xff]  ;;  %v316_v38 = vld [vmem:[%s1379_s10 + $0x60] sm:$0xff] }
  0x82   : > { %507 = vmatpush.xpose.msra.mxu2 %v360_v12  ;;  %572 = vmatpush.xpose.msra.mxu3 %v361_v13  ;;  %v317_v39 = vld [vmem:[%s1379_s10 + $0x68] sm:$0xff]  ;;  %v346_v40 = vld [vmem:[%s1379_s10 + $0x150] sm:$0xff]  ;;  %v347_v41 = vld [vmem:[%s1379_s10 + $0x158] sm:$0xff] }
  0x83   : > { %377 = vmatpush.xpose.msra.mxu0 %v328_v14  ;;  %442 = vmatpush.xpose.msra.mxu1 %v329_v15  ;;  %v314_v42 = vld [vmem:[%s1379_s10 + $0x50] sm:$0xff]  ;;  %v315_v43 = vld [vmem:[%s1379_s10 + $0x58] sm:$0xff]  ;;  %v344_v44 = vld [vmem:[%s1379_s10 + $0x140] sm:$0xff] }
  0x84   : > { %v345_v45 = vld [vmem:[%s1379_s10 + $0x148] sm:$0xff]  ;;  %v312_v46 = vld [vmem:[%s1379_s10 + $0x40] sm:$0xff]  ;;  %v342_v48 = vld [vmem:[%s1379_s10 + $0x130] sm:$0xff] }
  0x85   : > { %v313_v47 = vld [vmem:[%s1379_s10 + $0x48] sm:$0xff]  ;;  %v343_v49 = vld [vmem:[%s1379_s10 + $0x138] sm:$0xff]  ;;  %v310_v50 = vld [vmem:[%s1379_s10 + $0x30] sm:$0xff] }
  0x86   : > { %508 = vmatpush.xpose.msra.mxu2 %v358_v16  ;;  %573 = vmatpush.xpose.msra.mxu3 %v359_v17  ;;  %v311_v51 = vld [vmem:[%s1379_s10 + $0x38] sm:$0xff]  ;;  %v340_v52 = vld [vmem:[%s1379_s10 + $0x120] sm:$0xff]  ;;  %v341_v53 = vld [vmem:[%s1379_s10 + $0x128] sm:$0xff] }
  0x87   : > { %378 = vmatpush.xpose.msra.mxu0 %v326_v18  ;;  %443 = vmatpush.xpose.msra.mxu1 %v327_v19  ;;  %v308_v54 = vld [vmem:[%s1379_s10 + $0x20] sm:$0xff]  ;;  %v309_v55 = vld [vmem:[%s1379_s10 + $0x28] sm:$0xff]  ;;  %v338_v56 = vld [vmem:[%s1379_s10 + $0x110] sm:$0xff] }
  0x88   : > { %v339_v57 = vld [vmem:[%s1379_s10 + $0x118] sm:$0xff]  ;;  %v306_v58 = vld [vmem:[%s1379_s10 + $0x10] sm:$0xff]  ;;  %v336_v60 = vld [vmem:[%s1379_s10 + $0x100] sm:$0xff] }
  0x89   : > { %v307_v59 = vld [vmem:[%s1379_s10 + $0x18] sm:$0xff]  ;;  %v337_v61 = vld [vmem:[%s1379_s10 + $0x108] sm:$0xff]  ;;  %v304_v62 = vld [vmem:[%s1379_s10] sm:$0xff] }
  0x8a   : > { %509 = vmatpush.xpose.msra.mxu2 %v356_v20  ;;  %574 = vmatpush.xpose.msra.mxu3 %v357_v21  ;;  %v305_v63 = vld [vmem:[%s1379_s10 + $0x8] sm:$0xff]  ;;  %v272_v0 = vld [vmem:[#allocation2] sm:$0xff]  ;;  %v274_v2 = vld [vmem:[#allocation2 + $0x10] sm:$0xff]  ;;  %s845_s10 = sshll.u32 %s1199_s25, 6 }
  0x8b   : > { %379 = vmatpush.xpose.msra.mxu0 %v324_v22  ;;  %444 = vmatpush.xpose.msra.mxu1 %v325_v23  ;;  %v273_v1 = vld [vmem:[#allocation2 + $0x8] sm:$0xff]  ;;  %v275_v3 = vld [vmem:[#allocation2 + $0x18] sm:$0xff]  ;;  %v276_v4 = vld [vmem:[#allocation2 + $0x20] sm:$0xff] }
  0x8c   : > { %v277_v5 = vld [vmem:[#allocation2 + $0x28] sm:$0xff]  ;;  %v278_v6 = vld [vmem:[#allocation2 + $0x30] sm:$0xff]  ;;  %v279_v7 = vld [vmem:[#allocation2 + $0x38] sm:$0xff] }
  0x8d   : > { %v280_v8 = vld [vmem:[#allocation2 + $0x40] sm:$0xff]  ;;  %v281_v9 = vld [vmem:[#allocation2 + $0x48] sm:$0xff]  ;;  %v282_v10 = vld [vmem:[#allocation2 + $0x50] sm:$0xff] }
  0x8e   : > { %510 = vmatpush.xpose.msra.mxu2 %v354_v24  ;;  %575 = vmatpush.xpose.msra.mxu3 %v355_v25  ;;  %v283_v11 = vld [vmem:[#allocation2 + $0x58] sm:$0xff]  ;;  %v284_v12 = vld [vmem:[#allocation2 + $0x60] sm:$0xff]  ;;  %v285_v13 = vld [vmem:[#allocation2 + $0x68] sm:$0xff] }
  0x8f   : > { %380 = vmatpush.xpose.msra.mxu0 %v322_v26  ;;  %445 = vmatpush.xpose.msra.mxu1 %v323_v27  ;;  %v286_v14 = vld [vmem:[#allocation2 + $0x70] sm:$0xff]  ;;  %v287_v15 = vld [vmem:[#allocation2 + $0x78] sm:$0xff]  ;;  %v288_v16 = vld [vmem:[#allocation2 + $0x80] sm:$0xff] }
  0x90   : > { %v289_v17 = vld [vmem:[#allocation2 + $0x88] sm:$0xff]  ;;  %v290_v18 = vld [vmem:[#allocation2 + $0x90] sm:$0xff]  ;;  %v291_v19 = vld [vmem:[#allocation2 + $0x98] sm:$0xff] }
  0x91   : > { %v292_v20 = vld [vmem:[#allocation2 + $0xa0] sm:$0xff]  ;;  %v293_v21 = vld [vmem:[#allocation2 + $0xa8] sm:$0xff]  ;;  %v294_v22 = vld [vmem:[#allocation2 + $0xb0] sm:$0xff] }
  0x92   : > { %511 = vmatpush.xpose.msra.mxu2 %v352_v28  ;;  %576 = vmatpush.xpose.msra.mxu3 %v353_v29  ;;  %v295_v23 = vld [vmem:[#allocation2 + $0xb8] sm:$0xff]  ;;  %v296_v24 = vld [vmem:[#allocation2 + $0xc0] sm:$0xff]  ;;  %v297_v25 = vld [vmem:[#allocation2 + $0xc8] sm:$0xff] }
  0x93   : > { %381 = vmatpush.xpose.msra.mxu0 %v320_v30  ;;  %446 = vmatpush.xpose.msra.mxu1 %v321_v31  ;;  %v298_v26 = vld [vmem:[#allocation2 + $0xd0] sm:$0xff]  ;;  %v299_v27 = vld [vmem:[#allocation2 + $0xd8] sm:$0xff]  ;;  %v300_v28 = vld [vmem:[#allocation2 + $0xe0] sm:$0xff] }
  0x94   : > { %v301_v29 = vld [vmem:[#allocation2 + $0xe8] sm:$0xff]  ;;  %v302_v30 = vld [vmem:[#allocation2 + $0xf0] sm:$0xff]  ;;  %v303_v31 = vld [vmem:[#allocation2 + $0xf8] sm:$0xff] }
  0x96   : > { %512 = vmatpush.xpose.msra.mxu2 %v350_v32  ;;  %577 = vmatpush.xpose.msra.mxu3 %v351_v33  ;;  %v368_v32 = vld [vmem:[%s1385_s22] sm:$0x3]  ;;  %s679_s22 = sadd.s32 %s845_s10, %s837_s15 }
  0x97   : > { %382 = vmatpush.xpose.msra.mxu0 %v318_v34  ;;  %447 = vmatpush.xpose.msra.mxu1 %v319_v35  ;;  %v1493_v33 = vperm.slane %v368_v32, 0  ;;  %s839_s30 = sshll.u32 %s679_s22, 3 }
  0x98   : > { %s681_s6 = scalar_lea.hbm %s1620_s4, %s839_s30 }
  0x99   : > { %s684_s11 = sshll.u32 %s681_s6, 4  ;;  %s685_s11 = int_to_ptr.hbm [resolvable:$true] %s684_s11 }
  0x9a   : > { %513 = vmatpush.xpose.msra.mxu2 %v348_v36  ;;  %578 = vmatpush.xpose.msra.mxu3 %v349_v37  ;;  %v1496_v37 = vperm.slane %v368_v32, 1  ;;  %s1087_s12 = sshra.s32 %s685_s11, 4  ;;  %s1088_s12 = int_to_ptr.hbm [resolvable:$true] %s1087_s12 }
  0x9b   : > { %383 = vmatpush.xpose.msra.mxu0 %v316_v38  ;;  %448 = vmatpush.xpose.msra.mxu1 %v317_v39  ;;  %s1089_s13 = scalar_lea.hbm %s1088_s12, 256  ;;  %p1094_p11 = scmp.lt.s32.totalorder %s1088_s12, %s1620_s4 }
  0x9c   : > { %p1090_p8 = scmp.ne.s32.totalorder %s1088_s12, %s1089_s13  ;;  %p1095_p12 = scmp.lt.s32.totalorder %s1093_s3, %s1089_s13 }
  0x9e   : > { %514 = vmatpush.xpose.msra.mxu2 %v346_v40  ;;  %579 = vmatpush.xpose.msra.mxu3 %v347_v41  ;;  %p1091_p9 = pnand %p1090_p8, %p1348_p13  ;;  %p1096_p0 = por %p1095_p12, %p1094_p11 }
  0x9f   : > { %384 = vmatpush.xpose.msra.mxu0 %v314_v42  ;;  %449 = vmatpush.xpose.msra.mxu1 %v315_v43 }
  0xa0   : > { %p1092_p10 = pneg %p1091_p9 }
  0xa2   : > { %515 = vmatpush.xpose.msra.mxu2 %v344_v44  ;;  %580 = vmatpush.xpose.msra.mxu3 %v345_v45  ;;  %p1097_p1 = pnand %p1096_p0, %p1092_p10 }
  0xa3   : > { %385 = vmatpush.xpose.msra.mxu0 %v312_v46  ;;  %450 = vmatpush.xpose.msra.mxu1 %v313_v47 }
  0xa6   : > { %516 = vmatpush.xpose.msra.mxu2 %v342_v48  ;;  %581 = vmatpush.xpose.msra.mxu3 %v343_v49 }
  0xa7   : > { %386 = vmatpush.xpose.msra.mxu0 %v310_v50  ;;  %451 = vmatpush.xpose.msra.mxu1 %v311_v51 }
  0xaa   : > { %517 = vmatpush.xpose.msra.mxu2 %v340_v52  ;;  %582 = vmatpush.xpose.msra.mxu3 %v341_v53 }
  0xab   : > { %387 = vmatpush.xpose.msra.mxu0 %v308_v54  ;;  %452 = vmatpush.xpose.msra.mxu1 %v309_v55 }
  0xae   : > { %518 = vmatpush.xpose.msra.mxu2 %v338_v56  ;;  %583 = vmatpush.xpose.msra.mxu3 %v339_v57 }
  0xaf   : > { %388 = vmatpush.xpose.msra.mxu0 %v306_v58  ;;  %453 = vmatpush.xpose.msra.mxu1 %v307_v59 }
  0xb2   : > { %519 = vmatpush.xpose.msra.mxu2 %v336_v60  ;;  %584 = vmatpush.xpose.msra.mxu3 %v337_v61 }
  0xb3   : > { %389 = vmatpush.xpose.msra.mxu0 %v304_v62  ;;  %454 = vmatpush.xpose.msra.mxu1 %v305_v63 }
  0xb5   : > { %520 = vmatmul.f32.vlgmr.msra.gmra.mxu2 %v272_v0  ;;  %585 = vmatmul.f32.vlgmr.msra.gmra.mxu3 %v273_v1 }
  0xb6   : > { %390 = vmatmul.f32.vlgmr.msra.gmra.mxu0 %v272_v0  ;;  %455 = vmatmul.f32.vlgmr.msra.gmra.mxu1 %v273_v1 }
  0xbd   : > { %523 = vmatmul.f32.gmra.mxu2 %v274_v2  ;;  %588 = vmatmul.f32.gmra.mxu3 %v275_v3 }
  0xbe   : > { %393 = vmatmul.f32.gmra.mxu0 %v274_v2  ;;  %458 = vmatmul.f32.gmra.mxu1 %v275_v3 }
  0xc5   : > { %526 = vmatmul.f32.gmra.mxu2 %v276_v4  ;;  %591 = vmatmul.f32.gmra.mxu3 %v277_v5 }
  0xc6   : > { %396 = vmatmul.f32.gmra.mxu0 %v276_v4  ;;  %461 = vmatmul.f32.gmra.mxu1 %v277_v5 }
  0xcd   : > { %529 = vmatmul.f32.gmra.mxu2 %v278_v6  ;;  %594 = vmatmul.f32.gmra.mxu3 %v279_v7 }
  0xce   : > { %399 = vmatmul.f32.gmra.mxu0 %v278_v6  ;;  %464 = vmatmul.f32.gmra.mxu1 %v279_v7 }
  0xd5   : > { %532 = vmatmul.f32.gmra.mxu2 %v280_v8  ;;  %597 = vmatmul.f32.gmra.mxu3 %v281_v9 }
  0xd6   : > { %402 = vmatmul.f32.gmra.mxu0 %v280_v8  ;;  %467 = vmatmul.f32.gmra.mxu1 %v281_v9 }
  0xdd   : > { %535 = vmatmul.f32.gmra.mxu2 %v282_v10  ;;  %600 = vmatmul.f32.gmra.mxu3 %v283_v11 }
  0xde   : > { %405 = vmatmul.f32.gmra.mxu0 %v282_v10  ;;  %470 = vmatmul.f32.gmra.mxu1 %v283_v11 }
  0xe5   : > { %538 = vmatmul.f32.gmra.mxu2 %v284_v12  ;;  %603 = vmatmul.f32.gmra.mxu3 %v285_v13 }
  0xe6   : > { %408 = vmatmul.f32.gmra.mxu0 %v284_v12  ;;  %473 = vmatmul.f32.gmra.mxu1 %v285_v13 }
  0xed   : > { %541 = vmatmul.f32.gmra.mxu2 %v286_v14  ;;  %606 = vmatmul.f32.gmra.mxu3 %v287_v15 }
  0xee   : > { %411 = vmatmul.f32.gmra.mxu0 %v286_v14  ;;  %476 = vmatmul.f32.gmra.mxu1 %v287_v15 }
  0xf5   : > { %544 = vmatmul.f32.gmra.mxu2 %v288_v16  ;;  %609 = vmatmul.f32.gmra.mxu3 %v289_v17 }
  0xf6   : > { %414 = vmatmul.f32.gmra.mxu0 %v288_v16  ;;  %479 = vmatmul.f32.gmra.mxu1 %v289_v17 }
  0xfd   : > { %547 = vmatmul.f32.gmra.mxu2 %v290_v18  ;;  %612 = vmatmul.f32.gmra.mxu3 %v291_v19 }
  0xfe   : > { %417 = vmatmul.f32.gmra.mxu0 %v290_v18  ;;  %482 = vmatmul.f32.gmra.mxu1 %v291_v19 }
 0x105   : > { %550 = vmatmul.f32.gmra.mxu2 %v292_v20  ;;  %615 = vmatmul.f32.gmra.mxu3 %v293_v21 }
 0x106   : > { %420 = vmatmul.f32.gmra.mxu0 %v292_v20  ;;  %485 = vmatmul.f32.gmra.mxu1 %v293_v21 }
 0x10d   : > { %553 = vmatmul.f32.gmra.mxu2 %v294_v22  ;;  %618 = vmatmul.f32.gmra.mxu3 %v295_v23 }
 0x10e   : > { %423 = vmatmul.f32.gmra.mxu0 %v294_v22  ;;  %488 = vmatmul.f32.gmra.mxu1 %v295_v23 }
 0x115   : > { %556 = vmatmul.f32.gmra.mxu2 %v296_v24  ;;  %621 = vmatmul.f32.gmra.mxu3 %v297_v25 }
 0x116   : > { %426 = vmatmul.f32.gmra.mxu0 %v296_v24  ;;  %491 = vmatmul.f32.gmra.mxu1 %v297_v25 }
 0x11d   : > { %559 = vmatmul.f32.gmra.mxu2 %v298_v26  ;;  %624 = vmatmul.f32.gmra.mxu3 %v299_v27 }
 0x11e   : > { %429 = vmatmul.f32.gmra.mxu0 %v298_v26  ;;  %494 = vmatmul.f32.gmra.mxu1 %v299_v27 }
 0x125   : > { %562 = vmatmul.f32.gmra.mxu2 %v300_v28  ;;  %627 = vmatmul.f32.gmra.mxu3 %v301_v29 }
 0x126   : > { %432 = vmatmul.f32.gmra.mxu0 %v300_v28  ;;  %497 = vmatmul.f32.gmra.mxu1 %v301_v29 }
 0x12d   : > { %565 = vmatmul.f32.gmra.mxu2 %v302_v30  ;;  %630 = vmatmul.f32.gmra.mxu3 %v303_v31 }
 0x12e   : > { %435 = vmatmul.f32.gmra.mxu0 %v302_v30  ;;  %500 = vmatmul.f32.gmra.mxu1 %v303_v31 }
 0x133   : > { %v391_v34 = vpop.f32.mrf.mxu0  ;;  %v456_v35 = vpop.f32.mrf.mxu1 }
 0x134   : > { %v392_v36 = vadd.f32 %v391_v34, %v1493_v33 }
 0x136   : > { %v457_v38 = vadd.f32 %v456_v35, %v392_v36 }
 0x138   : > { %v521_v39 = vpop.f32.mrf.mxu2  ;;  %634 = vst [vmem:[%s1394_s18] sm:$0xff] %v457_v38  ;;  %v586_v40 = vpop.f32.mrf.mxu3 }
 0x139   : > { %v522_v41 = vadd.f32 %v521_v39, %v1496_v37 }
 0x13b   : > { %v587_v42 = vadd.f32 %v586_v40, %v522_v41  ;;  %v394_v43 = vpop.f32.mrf.mxu0  ;;  %v459_v44 = vpop.f32.mrf.mxu1 }
 0x13c   : > { %v395_v45 = vadd.f32 %v394_v43, %v1493_v33 }
 0x13d   : > { %635 = vst [vmem:[%s1394_s18 + $0x8] sm:$0xff] %v587_v42 }
 0x13e   : > { %v460_v46 = vadd.f32 %v459_v44, %v395_v45 }
 0x140   : > { %v524_v47 = vpop.f32.mrf.mxu2  ;;  %636 = vst [vmem:[%s1394_s18 + $0x10] sm:$0xff] %v460_v46  ;;  %v589_v48 = vpop.f32.mrf.mxu3 }
 0x141   : > { %v525_v49 = vadd.f32 %v524_v47, %v1496_v37 }
 0x143   : > { %v590_v50 = vadd.f32 %v589_v48, %v525_v49  ;;  %v397_v51 = vpop.f32.mrf.mxu0  ;;  %v462_v52 = vpop.f32.mrf.mxu1 }
 0x144   : > { %v398_v53 = vadd.f32 %v397_v51, %v1493_v33 }
 0x145   : > { %637 = vst [vmem:[%s1394_s18 + $0x18] sm:$0xff] %v590_v50 }
 0x146   : > { %v463_v54 = vadd.f32 %v462_v52, %v398_v53 }
 0x148   : > { %v527_v55 = vpop.f32.mrf.mxu2  ;;  %638 = vst [vmem:[%s1394_s18 + $0x20] sm:$0xff] %v463_v54  ;;  %v592_v56 = vpop.f32.mrf.mxu3 }
 0x149   : > { %v528_v57 = vadd.f32 %v527_v55, %v1496_v37 }
 0x14b   : > { %v593_v58 = vadd.f32 %v592_v56, %v528_v57  ;;  %v400_v59 = vpop.f32.mrf.mxu0  ;;  %v465_v60 = vpop.f32.mrf.mxu1 }
 0x14c   : > { %v401_v61 = vadd.f32 %v400_v59, %v1493_v33 }
 0x14d   : > { %639 = vst [vmem:[%s1394_s18 + $0x28] sm:$0xff] %v593_v58 }
 0x14e   : > { %v466_v62 = vadd.f32 %v465_v60, %v401_v61 }
 0x150   : > { %v530_v63 = vpop.f32.mrf.mxu2  ;;  %640 = vst [vmem:[%s1394_s18 + $0x30] sm:$0xff] %v466_v62  ;;  %v595_v0 = vpop.f32.mrf.mxu3 }
 0x151   : > { %v531_v1 = vadd.f32 %v530_v63, %v1496_v37 }
 0x153   : > { %v596_v2 = vadd.f32 %v595_v0, %v531_v1  ;;  %v403_v3 = vpop.f32.mrf.mxu0  ;;  %v468_v4 = vpop.f32.mrf.mxu1 }
 0x154   : > { %v404_v5 = vadd.f32 %v403_v3, %v1493_v33 }
 0x155   : > { %641 = vst [vmem:[%s1394_s18 + $0x38] sm:$0xff] %v596_v2 }
 0x156   : > { %v469_v6 = vadd.f32 %v468_v4, %v404_v5 }
 0x158   : > { %v533_v7 = vpop.f32.mrf.mxu2  ;;  %642 = vst [vmem:[%s1394_s18 + $0x40] sm:$0xff] %v469_v6  ;;  %v598_v8 = vpop.f32.mrf.mxu3 }
 0x159   : > { %v534_v9 = vadd.f32 %v533_v7, %v1496_v37 }
 0x15b   : > { %v599_v10 = vadd.f32 %v598_v8, %v534_v9  ;;  %v406_v11 = vpop.f32.mrf.mxu0  ;;  %v471_v12 = vpop.f32.mrf.mxu1 }
 0x15c   : > { %v407_v13 = vadd.f32 %v406_v11, %v1493_v33 }
 0x15d   : > { %643 = vst [vmem:[%s1394_s18 + $0x48] sm:$0xff] %v599_v10 }
 0x15e   : > { %v472_v14 = vadd.f32 %v471_v12, %v407_v13 }
 0x160   : > { %v536_v15 = vpop.f32.mrf.mxu2  ;;  %644 = vst [vmem:[%s1394_s18 + $0x50] sm:$0xff] %v472_v14  ;;  %v601_v16 = vpop.f32.mrf.mxu3 }
 0x161   : > { %v537_v17 = vadd.f32 %v536_v15, %v1496_v37 }
 0x163   : > { %v602_v18 = vadd.f32 %v601_v16, %v537_v17  ;;  %v409_v19 = vpop.f32.mrf.mxu0  ;;  %v474_v20 = vpop.f32.mrf.mxu1 }
 0x164   : > { %v410_v21 = vadd.f32 %v409_v19, %v1493_v33 }
 0x165   : > { %645 = vst [vmem:[%s1394_s18 + $0x58] sm:$0xff] %v602_v18 }
 0x166   : > { %v475_v22 = vadd.f32 %v474_v20, %v410_v21 }
 0x168   : > { %v539_v23 = vpop.f32.mrf.mxu2  ;;  %646 = vst [vmem:[%s1394_s18 + $0x60] sm:$0xff] %v475_v22  ;;  %v604_v24 = vpop.f32.mrf.mxu3 }
 0x169   : > { %v540_v25 = vadd.f32 %v539_v23, %v1496_v37 }
 0x16b   : > { %v605_v26 = vadd.f32 %v604_v24, %v540_v25  ;;  %v412_v27 = vpop.f32.mrf.mxu0  ;;  %v477_v28 = vpop.f32.mrf.mxu1 }
 0x16c   : > { %v413_v29 = vadd.f32 %v412_v27, %v1493_v33 }
 0x16d   : > { %647 = vst [vmem:[%s1394_s18 + $0x68] sm:$0xff] %v605_v26 }
 0x16e   : > { %v478_v30 = vadd.f32 %v477_v28, %v413_v29 }
 0x170   : > { %v542_v31 = vpop.f32.mrf.mxu2  ;;  %648 = vst [vmem:[%s1394_s18 + $0x70] sm:$0xff] %v478_v30  ;;  %v607_v32 = vpop.f32.mrf.mxu3 }
 0x171   : > { %v543_v34 = vadd.f32 %v542_v31, %v1496_v37 }
 0x173   : > { %v608_v35 = vadd.f32 %v607_v32, %v543_v34  ;;  %v415_v36 = vpop.f32.mrf.mxu0  ;;  %v480_v38 = vpop.f32.mrf.mxu1 }
 0x174   : > { %v416_v39 = vadd.f32 %v415_v36, %v1493_v33 }
 0x175   : > { %649 = vst [vmem:[%s1394_s18 + $0x78] sm:$0xff] %v608_v35 }
 0x176   : > { %v481_v40 = vadd.f32 %v480_v38, %v416_v39 }
 0x178   : > { %v545_v41 = vpop.f32.mrf.mxu2  ;;  %650 = vst [vmem:[%s1394_s18 + $0x80] sm:$0xff] %v481_v40  ;;  %v610_v42 = vpop.f32.mrf.mxu3 }
 0x179   : > { %v546_v43 = vadd.f32 %v545_v41, %v1496_v37 }
 0x17b   : > { %v611_v44 = vadd.f32 %v610_v42, %v546_v43  ;;  %v418_v45 = vpop.f32.mrf.mxu0  ;;  %v483_v46 = vpop.f32.mrf.mxu1 }
 0x17c   : > { %v419_v47 = vadd.f32 %v418_v45, %v1493_v33 }
 0x17d   : > { %651 = vst [vmem:[%s1394_s18 + $0x88] sm:$0xff] %v611_v44 }
 0x17e   : > { %v484_v48 = vadd.f32 %v483_v46, %v419_v47 }
 0x180   : > { %v548_v49 = vpop.f32.mrf.mxu2  ;;  %652 = vst [vmem:[%s1394_s18 + $0x90] sm:$0xff] %v484_v48  ;;  %v613_v50 = vpop.f32.mrf.mxu3 }
 0x181   : > { %v549_v51 = vadd.f32 %v548_v49, %v1496_v37 }
 0x183   : > { %v614_v52 = vadd.f32 %v613_v50, %v549_v51  ;;  %v421_v53 = vpop.f32.mrf.mxu0  ;;  %v486_v54 = vpop.f32.mrf.mxu1 }
 0x184   : > { %v422_v55 = vadd.f32 %v421_v53, %v1493_v33 }
 0x185   : > { %653 = vst [vmem:[%s1394_s18 + $0x98] sm:$0xff] %v614_v52 }
 0x186   : > { %v487_v56 = vadd.f32 %v486_v54, %v422_v55 }
 0x188   : > { %v551_v57 = vpop.f32.mrf.mxu2  ;;  %654 = vst [vmem:[%s1394_s18 + $0xa0] sm:$0xff] %v487_v56  ;;  %v616_v58 = vpop.f32.mrf.mxu3 }
 0x189   : > { %v552_v59 = vadd.f32 %v551_v57, %v1496_v37 }
 0x18b   : > { %v617_v60 = vadd.f32 %v616_v58, %v552_v59  ;;  %v424_v61 = vpop.f32.mrf.mxu0  ;;  %v489_v62 = vpop.f32.mrf.mxu1 }
 0x18c   : > { %v425_v63 = vadd.f32 %v424_v61, %v1493_v33 }
 0x18d   : > { %655 = vst [vmem:[%s1394_s18 + $0xa8] sm:$0xff] %v617_v60 }
 0x18e   : > { %v490_v0 = vadd.f32 %v489_v62, %v425_v63 }
 0x190   : > { %v554_v1 = vpop.f32.mrf.mxu2  ;;  %656 = vst [vmem:[%s1394_s18 + $0xb0] sm:$0xff] %v490_v0  ;;  %v619_v2 = vpop.f32.mrf.mxu3 }
 0x191   : > { %v555_v3 = vadd.f32 %v554_v1, %v1496_v37 }
 0x193   : > { %v620_v4 = vadd.f32 %v619_v2, %v555_v3  ;;  %v427_v5 = vpop.f32.mrf.mxu0  ;;  %v492_v6 = vpop.f32.mrf.mxu1 }
 0x194   : > { %v428_v7 = vadd.f32 %v427_v5, %v1493_v33 }
 0x195   : > { %657 = vst [vmem:[%s1394_s18 + $0xb8] sm:$0xff] %v620_v4 }
 0x196   : > { %v493_v8 = vadd.f32 %v492_v6, %v428_v7 }
 0x198   : > { %v557_v9 = vpop.f32.mrf.mxu2  ;;  %658 = vst [vmem:[%s1394_s18 + $0xc0] sm:$0xff] %v493_v8  ;;  %v622_v10 = vpop.f32.mrf.mxu3 }
 0x199   : > { %v558_v11 = vadd.f32 %v557_v9, %v1496_v37 }
 0x19b   : > { %v623_v12 = vadd.f32 %v622_v10, %v558_v11  ;;  %v430_v13 = vpop.f32.mrf.mxu0  ;;  %v495_v14 = vpop.f32.mrf.mxu1 }
 0x19c   : > { %v431_v15 = vadd.f32 %v430_v13, %v1493_v33 }
 0x19d   : > { %659 = vst [vmem:[%s1394_s18 + $0xc8] sm:$0xff] %v623_v12 }
 0x19e   : > { %v496_v16 = vadd.f32 %v495_v14, %v431_v15 }
 0x1a0   : > { %v560_v17 = vpop.f32.mrf.mxu2  ;;  %660 = vst [vmem:[%s1394_s18 + $0xd0] sm:$0xff] %v496_v16  ;;  %v625_v18 = vpop.f32.mrf.mxu3 }
 0x1a1   : > { %v561_v19 = vadd.f32 %v560_v17, %v1496_v37 }
 0x1a3   : > { %v626_v20 = vadd.f32 %v625_v18, %v561_v19  ;;  %v433_v21 = vpop.f32.mrf.mxu0  ;;  %v498_v22 = vpop.f32.mrf.mxu1 }
 0x1a4   : > { %v434_v23 = vadd.f32 %v433_v21, %v1493_v33 }
 0x1a5   : > { %661 = vst [vmem:[%s1394_s18 + $0xd8] sm:$0xff] %v626_v20 }
 0x1a6   : > { %v499_v24 = vadd.f32 %v498_v22, %v434_v23 }
 0x1a8   : > { %v563_v25 = vpop.f32.mrf.mxu2  ;;  %662 = vst [vmem:[%s1394_s18 + $0xe0] sm:$0xff] %v499_v24  ;;  %v628_v26 = vpop.f32.mrf.mxu3 }
 0x1a9   : > { %v564_v27 = vadd.f32 %v563_v25, %v1496_v37 }
 0x1ab   : > { %v629_v28 = vadd.f32 %v628_v26, %v564_v27  ;;  %v436_v29 = vpop.f32.mrf.mxu0  ;;  %v501_v30 = vpop.f32.mrf.mxu1 }
 0x1ac   : > { %v437_v31 = vadd.f32 %v436_v29, %v1493_v33 }
 0x1ad   : > { %663 = vst [vmem:[%s1394_s18 + $0xe8] sm:$0xff] %v629_v28 }
 0x1ae   : > { %v502_v32 = vadd.f32 %v501_v30, %v437_v31 }
 0x1b0   : > { %v566_v34 = vpop.f32.mrf.mxu2  ;;  %664 = vst [vmem:[%s1394_s18 + $0xf0] sm:$0xff] %v502_v32  ;;  %v631_v35 = vpop.f32.mrf.mxu3 }
 0x1b1   : > { %v567_v36 = vadd.f32 %v566_v34, %v1496_v37 }
 0x1b3   : > { %v632_v38 = vadd.f32 %v631_v35, %v567_v36 }
 0x1b5   : > { %665 = vst [vmem:[%s1394_s18 + $0xf8] sm:$0xff] %v632_v38 }
 0x1b6   : > { %1100 = shalt.err (!%p1097_p1)
}
 0x1b7   : > { %s1227_s18 = smov 256   ;;  %s1228_s2 = smov 512  }
 0x1b8   : > { %s1229_s5 = smov 16  }
 0x1b9   : > { %850 = dma.vmem_to_hbm [thread:$0]  (%p1348_p13), %s683_s23, 4096, %s685_s11, %s667_s8, %s1227_s18, %s1228_s2, %s1229_s5  }
 0x1ba PF: > { %p864_p4 = scmp.ge.s32.totalorder %s1211_s28, 2  ;;  %s699_s14 = sand.u32 1, %s1171_s19  }
 0x1bb   : > { %s700_s29 = scalar_lea.sflag [#allocation8], %s699_s14 }
 0x1bc   : > { %p860_p5 = pnand %p864_p4, %p1353_p2 }
 0x1be   : > { %p861_p6 = pneg %p860_p5 }
 0x1c0   : > { %1166 = dma.done.wait (%p861_p6), %s700_s29, 4096  }
 0x1c1   : > { %1168 = vsyncadd (%p861_p6), %s700_s29, 4294963200  ;;  %s31_s28 = sadd.s32 1, %s1211_s28   ;;  %s1646_s15 = sld [smem:[#allocation25_spill]] }
 0x1c2   : > { %p28_p7 = scmp.ge.s32.totalorder %s31_s28, 6   ;;  %s1647_s22 = sld [smem:[#allocation18_spill]] }
 0x1c3   : > { %s1648_s0 = sld [smem:[#allocation19_spill]]  ;;  %s1654_s19 = smov %s1175_s20 }
 0x1c4   : > { %s1649_s23 = sld [smem:[#allocation24_spill]]  ;;  %s1655_s20 = smov %s1179_s21 }
 0x1c5   : > { %s1650_s24 = sld [smem:[#allocation20_spill]]  ;;  %30 = sbr.rel (!%p28_p7) target bundleno = 18 (0x12), region = 128 }
 0x1c6   : > { %s1651_s25 = sld [smem:[#allocation21_spill]] }
 0x1c7   : > { %s1652_s26 = sld [smem:[#allocation22_spill]]  ;;  %s1656_s21 = smov %s1646_s15 }
 0x1c8   : > { %s1653_s27 = sld [smem:[#allocation23_spill]] }
 0x1ca   :  { %706 = vsyncpa [#allocation7], 1 }
 0x1cb   :  { %708 = vsyncpa [#allocation7 + $0x1], 1 }
 0x1cc   :  { %709 = vsyncpa [#allocation10], 1 }
 0x1cd   :  { %711 = vsyncpa [#allocation10 + $0x1], 1 }
 0x1ce   :  { %712 = vsyncpa [#allocation8], 1 }
 0x1cf   :  { %714 = vsyncpa [#allocation8 + $0x1], 1 }
 0x1d0   :  { %715 = vsyncmov [#allocation3] }
 0x1d3   :  { %s716_s16 = vpop.sfrf %715 }
 0x1d4   :  { %p842_p13 = scmp.ne.s32.totalorder %s716_s16, 0 }
 0x1d6   :  { %720 = shalt.err (%p842_p13)  }

</bundles_post_ra>
